<compile_context>
chip_gen: v6e
topology: v6e:2x2x1
jax: 0.10.0
libtpu: 0.0.40
codegen_flags: <defaults>
</compile_context>

<pallas_src>
import functools

import jax
import jax.numpy as jnp
import numpy as np
from jax.experimental import pallas as pl
from jax.experimental.pallas import tpu as pltpu

C_IN = 256          # input channels  (weights[1].shape[2])
C_OUT = 512         # output channels (weights[1].shape[0])
HW = 7              # spatial extent
KH = 3              # conv taps along W
ROW = 8             # rows per w-group (7 h-rows + 1 zero pad row -> sublane aligned)
WPAD = HW + 3       # padded w-groups: w = -1 .. 7 plus one extra zero group (80 rows)
NROWS = HW * ROW    # 56 valid output rows (row = w*8 + h)
NTILE = C_OUT // 2  # output-channel tile per grid step (2 steps -> 2 TCs on v7x)


def _kernel(x_ref, w2t_ref, w1ab_ref, o_ref, *, shift):
    # x_ref  : (80, 256)  bf16  row (w+1)*8 + h  = x[0, c, h, w]; zero pad rows elsewhere
    # w2t_ref: (768, 256) bf16  [kh*256 + c, i]  = W2[i, kh, c]   (this step's channel tile)
    # w1ab   : (8, 256)   f32   row0 = W1[:, a], row1 = W1[:, b]  (rest is zero padding)
    # o_ref  : (56, 256)  f32   [w*8 + h, i]     = t6[0, i, w, h] (h-roll applied in wrapper)
    x = x_ref[...]
    t4 = None
    for kh in range(KH):                                        # unrolled at trace time
        u = jnp.dot(x, w2t_ref[kh * C_IN:(kh + 1) * C_IN, :],
                    preferred_element_type=jnp.float32)         # (80, NTILE) on the MXU
        v = u[kh * ROW: kh * ROW + NROWS, :]                    # sublane-aligned (mult. of 8)
        t4 = v if t4 is None else t4 + v
    # The merged (w,2) roll+sum collapses to: t6 = t4*W1a + roll_w(t4, shift)*W1b.
    # With rows = w*8 + h the w-roll is an aligned roll by 8 sublanes (whole-vreg move).
    o_ref[...] = (t4 * w1ab_ref[0:1, :]
                  + jnp.roll(t4, ROW * shift, axis=0) * w1ab_ref[1:2, :])


def prepare_params(w1, w2, shift):
    """One-time weight layout (static module weights -> keep resident; never re-derived
    per call). W2t[kh*256 + c, i] = W2[i, kh, c], cast to bf16 (matmul accumulates f32)."""
    w2t = jnp.transpose(w2, (1, 2, 0)).reshape(KH * C_IN, C_OUT).astype(jnp.bfloat16)
    a = 0 if shift == 1 else 1
    w1ab = jnp.zeros((8, C_OUT), jnp.float32)
    w1ab = w1ab.at[0].set(w1[:, a]).at[1].set(w1[:, 1 - a])
    return jax.device_put(w2t), jax.device_put(w1ab)


@functools.partial(jax.jit, static_argnames=("shift",))
def kernel_generated_5_forward(x, w2t, w1ab, *, shift=1):
    # Activation layout: rows = (w+1)*8 + h, cols = input channel. Single ~50 KiB
    # transpose (the bf16 cast fuses into it); zero rows at the w = -1 / w >= 7 pad
    # groups and at h = 7 of every group give the unfold's zero padding for free.
    x0 = jnp.transpose(x[0], (2, 1, 0))                                  # (W, H, C)
    xg = jnp.pad(x0, ((1, WPAD - HW - 1), (0, ROW - HW), (0, 0)))        # (10, 8, 256)
    xT = xg.reshape(WPAD * ROW, C_IN).astype(jnp.bfloat16)               # (80, 256)

    out = pl.pallas_call(
        functools.partial(_kernel, shift=shift),
        grid=(C_OUT // NTILE,),
        in_specs=[
            pl.BlockSpec((WPAD * ROW, C_IN), lambda j: (0, 0)),          # activations
            pl.BlockSpec((KH * C_IN, NTILE), lambda j: (0, j)),          # W2 tile
            pl.BlockSpec((8, NTILE), lambda j: (0, j)),                  # W1 columns
        ],
        out_specs=pl.BlockSpec((NROWS, NTILE), lambda j: (0, j)),
        out_shape=jax.ShapeDtypeStruct((NROWS, C_OUT), jnp.float32),
        compiler_params=pltpu.CompilerParams(dimension_semantics=("parallel",)),
    )(xT, w2t, w1ab)

    # out[w*8 + h, i] == t6[0, i, w, h]; drop pad rows, return to NCHW and fuse the
    # final h-roll into this (already required) transpose copy.
    y = jnp.transpose(out.reshape(HW, ROW, C_OUT)[:, :HW, :], (2, 0, 1))  # (i, w, h)
    return jnp.roll(y, shift, axis=2)[None]


def reference(x, w1, w2, shift, *, bf16_operands=False):
    """Pure-JAX transcription of the PyTorch forward (verification)."""
    prec = jax.lax.Precision.HIGHEST
    if bf16_operands:  # emulate the kernel's bf16 matmul operands (f32 accumulation)
        x = x.astype(jnp.bfloat16).astype(jnp.float32)
        w2 = w2.astype(jnp.bfloat16).astype(jnp.float32)
    t3 = jnp.einsum('ikjl->ilkj', x).reshape(1, 1, HW, C_IN * HW)
    p = jnp.pad(t3, ((0, 0), (0, 0), (1, 1), (0, 0)))
    # F.unfold with kernel (3,1), padding (1,0)
    unf = jnp.stack([p[:, 0, kh:kh + HW, :] for kh in range(KH)], axis=1)
    t3u = unf.reshape(1, KH, HW, C_IN, HW)
    t4 = jnp.einsum('lknjm,ikj->linm', t3u, w2, precision=prec)
    t5 = jnp.einsum('kiml,ij->kimjl', t4, w1, precision=prec)
    t6 = jnp.roll(t5.reshape(1, C_OUT, 2 * HW, HW), shift, axis=2)
    t6 = t6.reshape(1, C_OUT, HW, 2, HW).sum(axis=3)
    return jnp.roll(t6, shift, axis=3)


if __name__ == "__main__":
    key = jax.random.PRNGKey(0)
    kx, k1, k2 = jax.random.split(key, 3)
    # The module's hard-coded reshapes (1792 = 256*7) force x = (1, 256, 7, 7).
    x = jax.random.normal(kx, (1, C_IN, HW, HW), dtype=jnp.float32)
    w1 = jax.random.normal(k1, (C_OUT, 2), dtype=jnp.float32)          # weights[0]
    w2 = jax.random.normal(k2, (C_OUT, KH, C_IN), dtype=jnp.float32)   # weights[1]

    # The module draws shift_direction = +/-1 once at __init__ (host RNG); validate both.
    for shift in (1, -1):
        w2t, w1ab = prepare_params(w1, w2, shift)
        y = jax.block_until_ready(kernel_generated_5_forward(x, w2t, w1ab, shift=shift))
        assert y.shape == (1, C_OUT, HW, HW)
        # Exact-semantics check against a reference using the same bf16 matmul operands.
        y_bf = jax.block_until_ready(reference(x, w1, w2, shift, bf16_operands=True))
        np.testing.assert_allclose(np.asarray(y), np.asarray(y_bf), rtol=1e-3, atol=1e-2)
        # Sanity check against the full-f32 reference (bf16 operand quantization only).
        y_f32 = jax.block_until_ready(reference(x, w1, w2, shift))
        np.testing.assert_allclose(np.asarray(y), np.asarray(y_f32), rtol=5e-2, atol=0.5)
    print("KERNEL_OK")
</pallas_src>

<mosaic_0001>
module attributes {stable_mosaic.version = 11 : i64} {
  func.func @_kernel(%arg0: i32, %arg1: memref<80x256xbf16, #tpu.memory_space<vmem>>, %arg2: memref<768x256xbf16, #tpu.memory_space<vmem>>, %arg3: memref<8x256xf32, #tpu.memory_space<vmem>>, %arg4: memref<56x256xf32, #tpu.memory_space<vmem>>) attributes {dimension_semantics = [#tpu.dimension_semantics<parallel>], iteration_bounds = array<i64: 2>, scalar_prefetch = 0 : i64, scratch_operands = 0 : i64, tpu.core_type = #tpu.core_type<tc>, window_params = [{pipeline_mode = #tpu.pipeline_mode<synchronous>, transform_indices = @transform_0, window_bounds = array<i64: 80, 256>}, {transform_indices = @transform_1, window_bounds = array<i64: 768, 256>}, {transform_indices = @transform_2, window_bounds = array<i64: 8, 256>}, {transform_indices = @transform_3, window_bounds = array<i64: 56, 256>}]} {
    %c0 = arith.constant 0 : index
    %c0_0 = arith.constant 0 : index
    %0 = vector.load %arg1[%c0, %c0_0] : memref<80x256xbf16, #tpu.memory_space<vmem>>, vector<80x256xbf16>
    %c0_1 = arith.constant 0 : index
    %c0_2 = arith.constant 0 : index
    %1 = vector.load %arg2[%c0_1, %c0_2] : memref<768x256xbf16, #tpu.memory_space<vmem>>, vector<256x256xbf16>
    %cst = arith.constant dense<0.000000e+00> : vector<80x256xf32>
    %2 = tpu.matmul %0, %1, %cst {dimension_numbers = #tpu.dot_dimension_numbers<[1], [0], [0], [1], [0, 0, 1, 1], [], []>} : vector<80x256xbf16>, vector<256x256xbf16>, vector<80x256xf32> -> vector<80x256xf32>
    %3 = vector.extract_strided_slice %2 {offsets = [0, 0], sizes = [56, 256], strides = [1, 1]} : vector<80x256xf32> to vector<56x256xf32>
    %c256 = arith.constant 256 : index
    %c0_3 = arith.constant 0 : index
    %4 = vector.load %arg2[%c256, %c0_3] : memref<768x256xbf16, #tpu.memory_space<vmem>>, vector<256x256xbf16>
    %cst_4 = arith.constant dense<0.000000e+00> : vector<80x256xf32>
    %5 = tpu.matmul %0, %4, %cst_4 {dimension_numbers = #tpu.dot_dimension_numbers<[1], [0], [0], [1], [0, 0, 1, 1], [], []>} : vector<80x256xbf16>, vector<256x256xbf16>, vector<80x256xf32> -> vector<80x256xf32>
    %6 = vector.extract_strided_slice %5 {offsets = [8, 0], sizes = [56, 256], strides = [1, 1]} : vector<80x256xf32> to vector<56x256xf32>
    %7 = arith.addf %3, %6 : vector<56x256xf32>
    %c512 = arith.constant 512 : index
    %c0_5 = arith.constant 0 : index
    %8 = vector.load %arg2[%c512, %c0_5] : memref<768x256xbf16, #tpu.memory_space<vmem>>, vector<256x256xbf16>
    %cst_6 = arith.constant dense<0.000000e+00> : vector<80x256xf32>
    %9 = tpu.matmul %0, %8, %cst_6 {dimension_numbers = #tpu.dot_dimension_numbers<[1], [0], [0], [1], [0, 0, 1, 1], [], []>} : vector<80x256xbf16>, vector<256x256xbf16>, vector<80x256xf32> -> vector<80x256xf32>
    %10 = vector.extract_strided_slice %9 {offsets = [16, 0], sizes = [56, 256], strides = [1, 1]} : vector<80x256xf32> to vector<56x256xf32>
    %11 = arith.addf %7, %10 : vector<56x256xf32>
    %c0_7 = arith.constant 0 : index
    %c0_8 = arith.constant 0 : index
    %12 = vector.load %arg3[%c0_7, %c0_8] : memref<8x256xf32, #tpu.memory_space<vmem>>, vector<1x256xf32>
    %13 = vector.broadcast %12 : vector<1x256xf32> to vector<56x256xf32>
    %14 = arith.mulf %11, %13 : vector<56x256xf32>
    %15 = vector.extract_strided_slice %11 {offsets = [48, 0], sizes = [8, 256], strides = [1, 1]} : vector<56x256xf32> to vector<8x256xf32>
    %16 = vector.extract_strided_slice %11 {offsets = [0, 0], sizes = [48, 256], strides = [1, 1]} : vector<56x256xf32> to vector<48x256xf32>
    %17 = tpu.concatenate %15, %16 in 0 : vector<8x256xf32>, vector<48x256xf32> -> vector<56x256xf32>
    %c1 = arith.constant 1 : index
    %c0_9 = arith.constant 0 : index
    %18 = vector.load %arg3[%c1, %c0_9] : memref<8x256xf32, #tpu.memory_space<vmem>>, vector<1x256xf32>
    %19 = vector.broadcast %18 : vector<1x256xf32> to vector<56x256xf32>
    %20 = arith.mulf %17, %19 : vector<56x256xf32>
    %21 = arith.addf %14, %20 : vector<56x256xf32>
    %c0_10 = arith.constant 0 : index
    %c0_11 = arith.constant 0 : index
    %22 = vector.load %arg4[%c0_10, %c0_11] : memref<56x256xf32, #tpu.memory_space<vmem>>, vector<56x256xf32>
    tpu.vector_store %arg4[%c0_10, %c0_11], %21 {strides = array<i32>} : memref<56x256xf32, #tpu.memory_space<vmem>>, vector<56x256xf32>,
    return
  }
  func.func @transform_0(%arg0: i32) -> (i32, i32) {
    %c0_i32 = arith.constant 0 : i32
    %c0_i32_0 = arith.constant 0 : i32
    %c0_i32_1 = arith.constant 0 : i32
    return %c0_i32, %c0_i32_0 : i32, i32
  }
  func.func @transform_1(%arg0: i32) -> (i32, i32) {
    %c0_i32 = arith.constant 0 : i32
    %c0_i32_0 = arith.constant 0 : i32
    return %c0_i32, %arg0 : i32, i32
  }
  func.func @transform_2(%arg0: i32) -> (i32, i32) {
    %c0_i32 = arith.constant 0 : i32
    %c0_i32_0 = arith.constant 0 : i32
    return %c0_i32, %arg0 : i32, i32
  }
  func.func @transform_3(%arg0: i32) -> (i32, i32) {
    %c0_i32 = arith.constant 0 : i32
    %c0_i32_0 = arith.constant 0 : i32
    return %c0_i32, %arg0 : i32, i32
  }
}

</mosaic_0001>

<bundles_post_ra>
// kernel: kernel_generated_5_forward.1
= control target key start
LH: loop header
LB: loop body
LE: loop exit
PB: predicated region body
PF: predicated region fallthrough
CT: control target
= control target key end

     0   :  { %8 = vsyncpa [#allocation3], 0  ;;  %s2137_s0 = inlined_call_operand.vmem [shape: bf16[80,256], index: 0, kind: input, shape index: {}]   ;;  %s2138_s1 = inlined_call_operand.hbm [shape: bf16[768,512], index: 1, kind: input, shape index: {}]   ;;  %s2139_s2 = inlined_call_operand.vmem [shape: f32[8,512], index: 2, kind: input, shape index: {}]   ;;  %s2140_s3 = inlined_call_operand.vmem [shape: f32[56,512], index: 3, kind: output, shape index: {}]  }
   0x1   :  { %10 = vsyncpa [#allocation3 + $0x1], 0  ;;  %s1757_s12 = smov 0   ;;  %s1759_s13 = smov 0  }
   0x2   :  { %s1761_s14 = smov 0   ;;  %s1763_s15 = smov 0  }
   0x3 LB: > { %s1776_s16 = sadd.s32 4294967295, %s1731_s15   ;;  %s1779_s17 = sadd.s32 1, %s1731_s15   ;;  %s1731_s15 = sphi %s1763_s15, %s2150_s15   ;;  %s1727_s14 = sphi %s1761_s14, %s2149_s14   ;;  %s1723_s13 = sphi %s1759_s13, %s2148_s13   ;;  %s1719_s12 = sphi %s1757_s12, %s2147_s12  }
   0x4   : > { %s41_s18 = ssub.s32 %s1731_s15, %s1779_s17  ;;  %s44_s19 = sadd.s32 1, %s1727_s14 }
   0x5   : > { %p42_p0 = scmp.eq.s32.totalorder %s41_s18, 0  ;;  %p51_p1 = scmp.ne.s32.totalorder %s1727_s14, %s1723_s13 }
   0x6   : > { %p52_p2 = scmp.eq.s32.totalorder %s1731_s15, 0  ;;  %p57_p3 = scmp.ne.s32.totalorder %s1723_s13, %s1719_s12 }
   0x7   : > { %s1789_s20 = scalar_select %p42_p0, %s1727_s14, %s44_s19  }
   0x8   : > { %p53_p4 = por %p52_p2, %p51_p1  ;;  %p58_p5 = scmp.eq.s32.totalorder %s1776_s16, 0 }
   0x9   : > { %p107_p6 = scmp.eq.s32.totalorder %s1776_s16, 1  ;;  %p1474_p8 = scmp.lt.s32.totalorder %s1731_s15, 2 }
   0xa   : > { %p1793_p7 = por %p58_p5, %p57_p3  ;;  %s136_s23 = sand.u32 1, %s1727_s14  }
   0xb   : > { %p1798_p9 = por %p107_p6, %p51_p1  ;;  %s1465_s24 = smul.u32 768, %s136_s23 }
   0xc   : > { %s2142_s21 = scalar_select %p1793_p7, 1, 0 }
   0xd   : > { %s2143_s22 = scalar_select %p1798_p9, 1, 0 }
   0xe   : > { %s1431_s25 = sshll.u32 %s1731_s15, 7  ;;  %p1804_p10 = pnand %p1474_p8, %p53_p4 }
   0xf   : > { %s1811_s29 = scalar_lea.hbm %s2138_s1, %s1431_s25  ;;  %s140_s30 = scalar_lea.vmem [#allocation2], %s1465_s24 }
  0x10   : > { %s147_s4 = sshll.u32 %s140_s30, 4  ;;  %s1815_s5 = scalar_lea.sflag [#allocation3], %s136_s23  ;;  %s1813_s4 = int_to_ptr.vmem [resolvable:$true] %s147_s4 }
  0x11   : > { %s1669_s6 = scalar_lea.hbm %s1811_s29, 12288  ;;  %p1671_p12 = pneg %p1804_p10 }
  0x12   : > { %p1670_p11 = scmp.ne.s32.totalorder %s1811_s29, %s1669_s6  ;;  %s1674_s9 = scalar_lea.hbm %s2138_s1, 24576 }
  0x13   : > { %p1675_p1 = scmp.lt.s32.totalorder %s1811_s29, %s2138_s1  ;;  %p1676_p2 = scmp.lt.s32.totalorder %s1674_s9, %s1669_s6 }
  0x14   : > { %p1672_p13 = pnand %p1671_p12, %p1670_p11 }
  0x15   : > { %p1677_p3 = por %p1676_p2, %p1675_p1 }
  0x16   : > { %p1673_p0 = pneg %p1672_p13 }
  0x18   : > { %p1678_p4 = pnand %p1677_p3, %p1673_p0 }
  0x1a   : > { %1681 = shalt.err (!%p1678_p4)
}
  0x1b   : > { %s1682_s12 = scalar_lea.vmem %s1813_s4, 12288  ;;  %s1733_s18 = smov [#allocation2]  }
  0x1c   : > { %p1683_p5 = scmp.ne.s32.totalorder %s1813_s4, %s1682_s12  ;;  %s1687_s19 = sshll.u32 %s1733_s18, 4  ;;  %s1688_s19 = int_to_ptr.vmem [resolvable:$false] %s1687_s19 }
  0x1d   : > { %s1689_s23 = scalar_lea.vmem %s1688_s19, 24576  ;;  %p1690_p11 = scmp.lt.s32.totalorder %s1813_s4, %s1688_s19 }
  0x1e   : > { %p1685_p6 = pnand %p1683_p5, %p1671_p12  ;;  %p1691_p13 = scmp.lt.s32.totalorder %s1689_s23, %s1682_s12 }
  0x20   : > { %p1686_p8 = pneg %p1685_p6  ;;  %p1692_p9 = por %p1691_p13, %p1690_p11 }
  0x22   : > { %p1693_p7 = pnand %p1692_p9, %p1686_p8 }
  0x24   : > { %1696 = shalt.err (!%p1693_p7)
}
  0x25   : > { %s1734_s24 = smov 256   ;;  %s1735_s25 = smov 128  }
  0x26   : > { %s1736_s27 = smov 8   ;;  %p1317_p12 = scmp.ge.s32.totalorder %s1731_s15, 1 }
  0x27   : > { %1473 = dma.hbm_to_vmem [thread:$0]  (!%p1804_p10), %s1811_s29, 12288, %s1813_s4, %s1815_s5, %s1734_s24, %s1735_s25, %s1736_s27  }
  0x28   : > { %p164_p0 = scmp.lt.s32.totalorder %s1731_s15, 3 }
  0x2a   : > { %p165_p1 = pnand %p1317_p12, %p164_p0 }
  0x2b   : > { %s1839_s28 = sand.u32 (!%p165_p1), 1, %s1723_s13   ;;  %p2145_p7 = scmp.ne.s32.totalorder (!%p165_p1), %s2142_s21, 0 }
  0x2c   : > { %168 = sbr.rel (%p165_p1) target bundleno = 409 (0x199), region = 32  ;;  %s171_s6 = scalar_lea.sflag (!%p165_p1), [#allocation3], %s1839_s28 }
  0x2d   : > { %s1466_s30 = smul.u32 (!%p165_p1), 768, %s1839_s28 }
  0x2f   : > { %s1843_s7 = scalar_lea.vmem (!%p165_p1), [#allocation2], %s1466_s30 }
  0x31   : > { %1714 = dma.done.wait (%p2145_p7), %s171_s6, 12288  }
  0x32   : > { %1716 = vsyncadd (%p2145_p7), %s171_s6, 4294955008  ;;  %v1510_v0 = vld [vmem:[%s1843_s7 + $0x74] ss:$8 sps:$4 sm:$0xff]   ;;  %v1514_v2 = vld [vmem:[%s1843_s7 + $0x70] ss:$8 sps:$4 sm:$0xff]   ;;  %s1467_s5 = smul.u32 112, %s1839_s28 }
  0x33   : > { %v1512_v1 = vld [vmem:[%s1843_s7 + $0x174] ss:$8 sps:$4 sm:$0xff]   ;;  %461 = vmatprep.subr.bf16.mxu0 %v1510_v0  ;;  %v1515_v3 = vld [vmem:[%s1843_s7 + $0x170] ss:$8 sps:$4 sm:$0xff]   ;;  %v1516_v4 = vld [vmem:[%s1843_s7 + $0x64] ss:$8 sps:$4 sm:$0xff]  }
  0x34   : > { %730 = vmatprep.subr.bf16.mxu1 %v1512_v1  ;;  %462 = vmatpush1.bf16.msra.mxu0 %v1514_v2  ;;  %v1518_v5 = vld [vmem:[%s1843_s7 + $0x164] ss:$8 sps:$4 sm:$0xff]   ;;  %v1520_v6 = vld [vmem:[%s1843_s7 + $0x60] ss:$8 sps:$4 sm:$0xff]   ;;  %v1522_v8 = vld [vmem:[%s1843_s7 + $0x54] ss:$8 sps:$4 sm:$0xff]  }
  0x35   : > { %731 = vmatpush1.bf16.msra.mxu1 %v1515_v3  ;;  %463 = vmatprep.subr.bf16.mxu0 %v1516_v4  ;;  %v1521_v7 = vld [vmem:[%s1843_s7 + $0x160] ss:$8 sps:$4 sm:$0xff]   ;;  %v1524_v9 = vld [vmem:[%s1843_s7 + $0x154] ss:$8 sps:$4 sm:$0xff]   ;;  %v1526_v10 = vld [vmem:[%s1843_s7 + $0x50] ss:$8 sps:$4 sm:$0xff]  }
  0x36   : > { %732 = vmatprep.subr.bf16.mxu1 %v1518_v5  ;;  %v1527_v11 = vld [vmem:[%s1843_s7 + $0x150] ss:$8 sps:$4 sm:$0xff]   ;;  %v1528_v12 = vld [vmem:[%s1843_s7 + $0x44] ss:$8 sps:$4 sm:$0xff]   ;;  %v1532_v14 = vld [vmem:[%s1843_s7 + $0x40] ss:$8 sps:$4 sm:$0xff]  }
  0x37   : > { %v1530_v13 = vld [vmem:[%s1843_s7 + $0x144] ss:$8 sps:$4 sm:$0xff]   ;;  %v1533_v15 = vld [vmem:[%s1843_s7 + $0x140] ss:$8 sps:$4 sm:$0xff]   ;;  %v1534_v16 = vld [vmem:[%s1843_s7 + $0x34] ss:$8 sps:$4 sm:$0xff]  }
  0x38   : > { %464 = vmatpush1.bf16.msra.mxu0 %v1520_v6  ;;  %v1536_v17 = vld [vmem:[%s1843_s7 + $0x134] ss:$8 sps:$4 sm:$0xff]   ;;  %v1538_v18 = vld [vmem:[%s1843_s7 + $0x30] ss:$8 sps:$4 sm:$0xff]   ;;  %v1540_v20 = vld [vmem:[%s1843_s7 + $0x24] ss:$8 sps:$4 sm:$0xff]  }
  0x39   : > { %733 = vmatpush1.bf16.msra.mxu1 %v1521_v7  ;;  %465 = vmatprep.subr.bf16.mxu0 %v1522_v8  ;;  %v1539_v19 = vld [vmem:[%s1843_s7 + $0x130] ss:$8 sps:$4 sm:$0xff]   ;;  %v1542_v21 = vld [vmem:[%s1843_s7 + $0x124] ss:$8 sps:$4 sm:$0xff]   ;;  %v1544_v22 = vld [vmem:[%s1843_s7 + $0x20] ss:$8 sps:$4 sm:$0xff]  }
  0x3a   : > { %734 = vmatprep.subr.bf16.mxu1 %v1524_v9  ;;  %v1545_v23 = vld [vmem:[%s1843_s7 + $0x120] ss:$8 sps:$4 sm:$0xff]   ;;  %v1546_v24 = vld [vmem:[%s1843_s7 + $0x14] ss:$8 sps:$4 sm:$0xff]   ;;  %v1550_v26 = vld [vmem:[%s1843_s7 + $0x10] ss:$8 sps:$4 sm:$0xff]  }
  0x3b   : > { %v1548_v25 = vld [vmem:[%s1843_s7 + $0x114] ss:$8 sps:$4 sm:$0xff]   ;;  %v1551_v27 = vld [vmem:[%s1843_s7 + $0x110] ss:$8 sps:$4 sm:$0xff]   ;;  %v1552_v28 = vld [vmem:[%s1843_s7 + $0x4] ss:$8 sps:$4 sm:$0xff]  }
  0x3c   : > { %466 = vmatpush1.bf16.msra.mxu0 %v1526_v10  ;;  %v1554_v29 = vld [vmem:[%s1843_s7 + $0x104] ss:$8 sps:$4 sm:$0xff]   ;;  %v1556_v30 = vld [vmem:[%s1843_s7] ss:$8 sps:$4 sm:$0xff]   ;;  %v1558_v32 = vld [vmem:[%s1843_s7 + $0xf4] ss:$8 sps:$4 sm:$0xff]  }
  0x3d   : > { %735 = vmatpush1.bf16.msra.mxu1 %v1527_v11  ;;  %467 = vmatprep.subr.bf16.mxu0 %v1528_v12  ;;  %v1557_v31 = vld [vmem:[%s1843_s7 + $0x100] ss:$8 sps:$4 sm:$0xff]   ;;  %v1560_v33 = vld [vmem:[%s1843_s7 + $0x1f4] ss:$8 sps:$4 sm:$0xff]   ;;  %v1562_v34 = vld [vmem:[%s1843_s7 + $0xf0] ss:$8 sps:$4 sm:$0xff]  }
  0x3e   : > { %736 = vmatprep.subr.bf16.mxu1 %v1530_v13  ;;  %v1563_v35 = vld [vmem:[%s1843_s7 + $0x1f0] ss:$8 sps:$4 sm:$0xff]   ;;  %v1564_v36 = vld [vmem:[%s1843_s7 + $0xe4] ss:$8 sps:$4 sm:$0xff]   ;;  %v1568_v38 = vld [vmem:[%s1843_s7 + $0xe0] ss:$8 sps:$4 sm:$0xff]  }
  0x3f   : > { %v1566_v37 = vld [vmem:[%s1843_s7 + $0x1e4] ss:$8 sps:$4 sm:$0xff]   ;;  %v1569_v39 = vld [vmem:[%s1843_s7 + $0x1e0] ss:$8 sps:$4 sm:$0xff]   ;;  %v1570_v40 = vld [vmem:[%s1843_s7 + $0xd4] ss:$8 sps:$4 sm:$0xff]  }
  0x40   : > { %468 = vmatpush1.bf16.msra.mxu0 %v1532_v14  ;;  %v1572_v41 = vld [vmem:[%s1843_s7 + $0x1d4] ss:$8 sps:$4 sm:$0xff]   ;;  %v1574_v42 = vld [vmem:[%s1843_s7 + $0xd0] ss:$8 sps:$4 sm:$0xff]   ;;  %v1576_v44 = vld [vmem:[%s1843_s7 + $0xc4] ss:$8 sps:$4 sm:$0xff]  }
  0x41   : > { %737 = vmatpush1.bf16.msra.mxu1 %v1533_v15  ;;  %469 = vmatprep.subr.bf16.mxu0 %v1534_v16  ;;  %v1575_v43 = vld [vmem:[%s1843_s7 + $0x1d0] ss:$8 sps:$4 sm:$0xff]   ;;  %v1578_v45 = vld [vmem:[%s1843_s7 + $0x1c4] ss:$8 sps:$4 sm:$0xff]   ;;  %v1580_v46 = vld [vmem:[%s1843_s7 + $0xc0] ss:$8 sps:$4 sm:$0xff]  }
  0x42   : > { %738 = vmatprep.subr.bf16.mxu1 %v1536_v17  ;;  %v1581_v47 = vld [vmem:[%s1843_s7 + $0x1c0] ss:$8 sps:$4 sm:$0xff]   ;;  %v1900_v48 = vld [vmem:[%s2137_s0 + $0x4] ss:$8 sps:$4 sm:$0xff]   ;;  %v1582_v49 = vld [vmem:[%s1843_s7 + $0xb4] ss:$8 sps:$4 sm:$0xff]  }
  0x43   : > { %v1584_v50 = vld [vmem:[%s1843_s7 + $0x1b4] ss:$8 sps:$4 sm:$0xff]   ;;  %493 = vmatprep.mubr.bf16.mxu0 %v1900_v48  ;;  %762 = vmatprep.mubr.bf16.mxu1 %v1900_v48  ;;  %v1586_v51 = vld [vmem:[%s1843_s7 + $0xb0] ss:$8 sps:$4 sm:$0xff]   ;;  %v1588_v53 = vld [vmem:[%s1843_s7 + $0xa4] ss:$8 sps:$4 sm:$0xff]  }
  0x44   : > { %470 = vmatpush1.bf16.msra.mxu0 %v1538_v18  ;;  %v1587_v52 = vld [vmem:[%s1843_s7 + $0x1b0] ss:$8 sps:$4 sm:$0xff]   ;;  %v1590_v54 = vld [vmem:[%s1843_s7 + $0x1a4] ss:$8 sps:$4 sm:$0xff]   ;;  %v1592_v55 = vld [vmem:[%s1843_s7 + $0xa0] ss:$8 sps:$4 sm:$0xff]  }
  0x45   : > { %739 = vmatpush1.bf16.msra.mxu1 %v1539_v19  ;;  %471 = vmatprep.subr.bf16.mxu0 %v1540_v20  ;;  %v1593_v56 = vld [vmem:[%s1843_s7 + $0x1a0] ss:$8 sps:$4 sm:$0xff]   ;;  %v1594_v57 = vld [vmem:[%s1843_s7 + $0x94] ss:$8 sps:$4 sm:$0xff]   ;;  %v1598_v59 = vld [vmem:[%s1843_s7 + $0x90] ss:$8 sps:$4 sm:$0xff]  }
  0x46   : > { %740 = vmatprep.subr.bf16.mxu1 %v1542_v21  ;;  %v1596_v58 = vld [vmem:[%s1843_s7 + $0x194] ss:$8 sps:$4 sm:$0xff]   ;;  %v1599_v60 = vld [vmem:[%s1843_s7 + $0x190] ss:$8 sps:$4 sm:$0xff]   ;;  %v1600_v61 = vld [vmem:[%s1843_s7 + $0x84] ss:$8 sps:$4 sm:$0xff]  }
  0x47   : > { %v1602_v62 = vld [vmem:[%s1843_s7 + $0x184] ss:$8 sps:$4 sm:$0xff]   ;;  %v1604_v63 = vld [vmem:[%s1843_s7 + $0x80] ss:$8 sps:$4 sm:$0xff]   ;;  %v1611_v1 = vld [vmem:[%s1843_s7 + $0x274] ss:$8 sps:$4 sm:$0xff]  }
  0x48   : > { %472 = vmatpush1.bf16.msra.mxu0 %v1544_v22  ;;  %v1605_v0 = vld [vmem:[%s1843_s7 + $0x180] ss:$8 sps:$4 sm:$0xff]   ;;  %v1609_v3 = vld [vmem:[%s1843_s7 + $0x270] ss:$8 sps:$4 sm:$0xff]   ;;  %v1614_v4 = vld [vmem:[%s1843_s7 + $0x264] ss:$8 sps:$4 sm:$0xff]  }
  0x49   : > { %741 = vmatpush1.bf16.msra.mxu1 %v1545_v23  ;;  %473 = vmatprep.subr.bf16.mxu0 %v1546_v24  ;;  %v1924_v2 = vld [vmem:[%s2137_s0] ss:$8 sps:$4 sm:$0xff]   ;;  %v1931_v5 = vld [vmem:[%s2137_s0 + $0x14] ss:$8 sps:$4 sm:$0xff]   ;;  %v1942_v8 = vld [vmem:[%s2137_s0 + $0x10] ss:$8 sps:$4 sm:$0xff]  }
  0x4a   : > { %742 = vmatprep.subr.bf16.mxu1 %v1548_v25  ;;  %v1612_v6 = vld [vmem:[%s1843_s7 + $0x260] ss:$8 sps:$4 sm:$0xff]   ;;  %v1620_v7 = vld [vmem:[%s1843_s7 + $0x254] ss:$8 sps:$4 sm:$0xff]   ;;  %v1618_v9 = vld [vmem:[%s1843_s7 + $0x250] ss:$8 sps:$4 sm:$0xff]  }
  0x4b   : > { %v1623_v10 = vld [vmem:[%s1843_s7 + $0x244] ss:$8 sps:$4 sm:$0xff]   ;;  %v1621_v12 = vld [vmem:[%s1843_s7 + $0x240] ss:$8 sps:$4 sm:$0xff]   ;;  %v1626_v13 = vld [vmem:[%s1843_s7 + $0x234] ss:$8 sps:$4 sm:$0xff]  }
  0x4c   : > { %474 = vmatpush1.bf16.msra.mxu0 %v1550_v26  ;;  %v1949_v11 = vld [vmem:[%s2137_s0 + $0x24] ss:$8 sps:$4 sm:$0xff]   ;;  %v1960_v14 = vld [vmem:[%s2137_s0 + $0x20] ss:$8 sps:$4 sm:$0xff]   ;;  %v1624_v15 = vld [vmem:[%s1843_s7 + $0x230] ss:$8 sps:$4 sm:$0xff]  }
  0x4d   : > { %743 = vmatpush1.bf16.msra.mxu1 %v1551_v27  ;;  %475 = vmatprep.subr.bf16.mxu0 %v1552_v28  ;;  %v1629_v16 = vld [vmem:[%s1843_s7 + $0x224] ss:$8 sps:$4 sm:$0xff]   ;;  %v1645_v17 = vld [vmem:[%s2137_s0 + $0x34] ss:$8 sps:$4 sm:$0xff]   ;;  %v1627_v18 = vld [vmem:[%s1843_s7 + $0x220] ss:$8 sps:$4 sm:$0xff]  }
  0x4e   : > { %744 = vmatprep.subr.bf16.mxu1 %v1554_v29  ;;  %v1632_v19 = vld [vmem:[%s1843_s7 + $0x214] ss:$8 sps:$4 sm:$0xff]   ;;  %v1974_v20 = vld [vmem:[%s2137_s0 + $0x30] ss:$8 sps:$4 sm:$0xff]   ;;  %v1635_v22 = vld [vmem:[%s1843_s7 + $0x204] ss:$8 sps:$4 sm:$0xff]  }
  0x4f   : > { %v1630_v21 = vld [vmem:[%s1843_s7 + $0x210] ss:$8 sps:$4 sm:$0xff]   ;;  %v1981_v23 = vld [vmem:[%s2137_s0 + $0x44] ss:$8 sps:$4 sm:$0xff]   ;;  %v1633_v24 = vld [vmem:[%s1843_s7 + $0x200] ss:$8 sps:$4 sm:$0xff]  }
  0x50   : > { %476 = vmatpush1.bf16.msra.mxu0 %v1556_v30  ;;  %v1641_v25 = vld [vmem:[%s1843_s7 + $0x2f4] ss:$8 sps:$4 sm:$0xff]   ;;  %v1659_v26 = vld [vmem:[%s2137_s0 + $0x40] ss:$8 sps:$4 sm:$0xff]   ;;  %v1639_v27 = vld [vmem:[%s1843_s7 + $0x2f0] ss:$8 sps:$4 sm:$0xff]  }
  0x51   : > { %745 = vmatpush1.bf16.msra.mxu1 %v1557_v31  ;;  %477 = vmatprep.subr.bf16.mxu0 %v1558_v32  ;;  %v1644_v28 = vld [vmem:[%s1843_s7 + $0x2e4] ss:$8 sps:$4 sm:$0xff]   ;;  %v1642_v29 = vld [vmem:[%s1843_s7 + $0x2e0] ss:$8 sps:$4 sm:$0xff]   ;;  %v1650_v30 = vld [vmem:[%s1843_s7 + $0x2d4] ss:$8 sps:$4 sm:$0xff]  }
  0x52   : > { %746 = vmatprep.subr.bf16.mxu1 %v1560_v33  ;;  %v1648_v31 = vld [vmem:[%s1843_s7 + $0x2d0] ss:$8 sps:$4 sm:$0xff]   ;;  %v1653_v32 = vld [vmem:[%s1843_s7 + $0x2c4] ss:$8 sps:$4 sm:$0xff]   ;;  %v1651_v33 = vld [vmem:[%s1843_s7 + $0x2c0] ss:$8 sps:$4 sm:$0xff]  }
  0x53   : > { %s2055_s28 = scalar_lea.vmem [#allocation4], %s1467_s5  ;;  %p2146_p10 = scmp.ne.s32.totalorder %s2143_s22, 0 }
  0x54   : > { %478 = vmatpush2.bf16.msra.mxu0 %v1562_v34  ;;  %v1656_v34 = vld [vmem:[%s1843_s7 + $0x2b4] ss:$8 sps:$4 sm:$0xff]   ;;  %s1432_s8 = sshll.u32 (%p2146_p10), %s1776_s16, 4 }
  0x55   : > { %747 = vmatpush2.bf16.msra.mxu1 %v1563_v35  ;;  %479 = vmatprep.subr.bf16.mxu0 %v1564_v36  ;;  %v1654_v35 = vld [vmem:[%s1843_s7 + $0x2b0] ss:$8 sps:$4 sm:$0xff]   ;;  %v1662_v36 = vld [vmem:[%s1843_s7 + $0x2a4] ss:$8 sps:$4 sm:$0xff]   ;;  %s1194_s11 = scalar_lea.vmem (%p2146_p10), %s2140_s3, %s1432_s8 }
  0x56   : > { %748 = vmatprep.subr.bf16.mxu1 %v1566_v37  ;;  %v1660_v37 = vld [vmem:[%s1843_s7 + $0x2a0] ss:$8 sps:$4 sm:$0xff]  }
  0x58   : > { %480 = vmatpush2.bf16.msra.mxu0 %v1568_v38  ;;  %v1665_v38 = vld [vmem:[%s1843_s7 + $0x294] ss:$8 sps:$4 sm:$0xff]  }
  0x59   : > { %749 = vmatpush2.bf16.msra.mxu1 %v1569_v39  ;;  %481 = vmatprep.subr.bf16.mxu0 %v1570_v40  ;;  %v1663_v39 = vld [vmem:[%s1843_s7 + $0x290] ss:$8 sps:$4 sm:$0xff]   ;;  %v1668_v40 = vld [vmem:[%s1843_s7 + $0x284] ss:$8 sps:$4 sm:$0xff]  }
  0x5a   : > { %750 = vmatprep.subr.bf16.mxu1 %v1572_v41  ;;  %v1666_v41 = vld [vmem:[%s1843_s7 + $0x280] ss:$8 sps:$4 sm:$0xff]   ;;  %s1318_s7 = sshll.u32 %s1776_s16, 1 }
  0x5b   : > { %p203_p9 = scmp.lt.s32.totalorder %s1318_s7, 3 }
  0x5c   : > { %482 = vmatpush2.bf16.msra.mxu0 %v1574_v42 }
  0x5d   : > { %751 = vmatpush2.bf16.msra.mxu1 %v1575_v43  ;;  %483 = vmatprep.subr.bf16.mxu0 %v1576_v44  ;;  %s2152_s7 = smov (!%p203_p9, %s1318_s7), 3 }
  0x5e   : > { %752 = vmatprep.subr.bf16.mxu1 %v1578_v45  ;;  %s1319_s21 = sshll.u32 %s2152_s7, 3 }
  0x5f   : > { %s206_s4 = scalar_lea.vmem %s2139_s2, %s1319_s21 }
  0x60   : > { %484 = vmatpush2.bf16.msra.mxu0 %v1580_v46 }
  0x61   : > { %753 = vmatpush2.bf16.msra.mxu1 %v1581_v47  ;;  %485 = vmatprep.subr.bf16.mxu0 %v1582_v49 }
  0x62   : > { %754 = vmatprep.subr.bf16.mxu1 %v1584_v50 }
  0x64   : > { %486 = vmatpush2.bf16.msra.mxu0 %v1586_v51 }
  0x65   : > { %755 = vmatpush2.bf16.msra.mxu1 %v1587_v52  ;;  %487 = vmatprep.subr.bf16.mxu0 %v1588_v53 }
  0x66   : > { %756 = vmatprep.subr.bf16.mxu1 %v1590_v54 }
  0x68   : > { %488 = vmatpush2.bf16.msra.mxu0 %v1592_v55 }
  0x69   : > { %757 = vmatpush2.bf16.msra.mxu1 %v1593_v56  ;;  %489 = vmatprep.subr.bf16.mxu0 %v1594_v57 }
  0x6a   : > { %758 = vmatprep.subr.bf16.mxu1 %v1596_v58 }
  0x6c   : > { %490 = vmatpush2.bf16.msra.mxu0 %v1598_v59 }
  0x6d   : > { %759 = vmatpush2.bf16.msra.mxu1 %v1599_v60  ;;  %491 = vmatprep.subr.bf16.mxu0 %v1600_v61 }
  0x6e   : > { %760 = vmatprep.subr.bf16.mxu1 %v1602_v62 }
  0x70   : > { %492 = vmatpush2.bf16.msra.mxu0 %v1604_v63 }
  0x71   : > { %761 = vmatpush2.bf16.msra.mxu1 %v1605_v0  ;;  %1013 = vmatprep.subr.bf16.mxu0 %v1611_v1 }
  0x72   : > { %1433 = vmatprep.subr.bf16.mxu1 %v1611_v1 }
  0x73   : > { %494 = vmatmul.mubr.bf16.vlgmr.msra.gmra.mxu0 %v1924_v2 }
  0x74   : > { %763 = vmatmul.mubr.bf16.vlgmr.msra.gmra.mxu1 %v1924_v2  ;;  %1014 = vmatpush1.bf16.msra.mxu0 %v1609_v3 }
  0x75   : > { %1449 = vmatpush1.bf16.msra.mxu1 %v1609_v3  ;;  %1015 = vmatprep.subr.bf16.mxu0 %v1614_v4 }
  0x76   : > { %1434 = vmatprep.subr.bf16.mxu1 %v1614_v4  ;;  %770 = vmatprep.mubr.bf16.mxu1 %v1931_v5 }
  0x77   : > { %503 = vmatprep.mubr.bf16.mxu0 %v1931_v5 }
  0x78   : > { %1016 = vmatpush1.bf16.msra.mxu0 %v1612_v6 }
  0x79   : > { %1450 = vmatpush1.bf16.msra.mxu1 %v1612_v6  ;;  %1017 = vmatprep.subr.bf16.mxu0 %v1620_v7 }
  0x7a   : > { %1435 = vmatprep.subr.bf16.mxu1 %v1620_v7 }
  0x7b   : > { %504 = vmatmul.mubr.bf16.gmra.mxu0 %v1942_v8 }
  0x7c   : > { %771 = vmatmul.mubr.bf16.gmra.mxu1 %v1942_v8  ;;  %1018 = vmatpush1.bf16.msra.mxu0 %v1618_v9 }
  0x7d   : > { %1451 = vmatpush1.bf16.msra.mxu1 %v1618_v9  ;;  %1019 = vmatprep.subr.bf16.mxu0 %v1623_v10 }
  0x7e   : > { %1436 = vmatprep.subr.bf16.mxu1 %v1623_v10  ;;  %780 = vmatprep.mubr.bf16.mxu1 %v1949_v11 }
  0x7f   : > { %513 = vmatprep.mubr.bf16.mxu0 %v1949_v11 }
  0x80   : > { %1020 = vmatpush1.bf16.msra.mxu0 %v1621_v12 }
  0x81   : > { %1452 = vmatpush1.bf16.msra.mxu1 %v1621_v12  ;;  %1021 = vmatprep.subr.bf16.mxu0 %v1626_v13 }
  0x82   : > { %1437 = vmatprep.subr.bf16.mxu1 %v1626_v13 }
  0x83   : > { %514 = vmatmul.mubr.bf16.gmra.mxu0 %v1960_v14 }
  0x84   : > { %781 = vmatmul.mubr.bf16.gmra.mxu1 %v1960_v14  ;;  %1022 = vmatpush1.bf16.msra.mxu0 %v1624_v15 }
  0x85   : > { %1453 = vmatpush1.bf16.msra.mxu1 %v1624_v15  ;;  %1023 = vmatprep.subr.bf16.mxu0 %v1629_v16 }
  0x86   : > { %1438 = vmatprep.subr.bf16.mxu1 %v1629_v16  ;;  %790 = vmatprep.mubr.bf16.mxu1 %v1645_v17 }
  0x87   : > { %523 = vmatprep.mubr.bf16.mxu0 %v1645_v17 }
  0x88   : > { %1024 = vmatpush1.bf16.msra.mxu0 %v1627_v18 }
  0x89   : > { %1454 = vmatpush1.bf16.msra.mxu1 %v1627_v18  ;;  %1025 = vmatprep.subr.bf16.mxu0 %v1632_v19 }
  0x8a   : > { %1439 = vmatprep.subr.bf16.mxu1 %v1632_v19 }
  0x8b   : > { %524 = vmatmul.mubr.bf16.gmra.mxu0 %v1974_v20 }
  0x8c   : > { %791 = vmatmul.mubr.bf16.gmra.mxu1 %v1974_v20  ;;  %1026 = vmatpush1.bf16.msra.mxu0 %v1630_v21 }
  0x8d   : > { %1455 = vmatpush1.bf16.msra.mxu1 %v1630_v21  ;;  %1027 = vmatprep.subr.bf16.mxu0 %v1635_v22 }
  0x8e   : > { %1440 = vmatprep.subr.bf16.mxu1 %v1635_v22  ;;  %531 = vmatprep.mubr.bf16.mxu0 %v1981_v23 }
  0x8f   : > { %800 = vmatprep.mubr.bf16.mxu1 %v1981_v23 }
  0x90   : > { %1028 = vmatpush1.bf16.msra.mxu0 %v1633_v24 }
  0x91   : > { %1456 = vmatpush1.bf16.msra.mxu1 %v1633_v24  ;;  %1029 = vmatprep.subr.bf16.mxu0 %v1641_v25 }
  0x92   : > { %1441 = vmatprep.subr.bf16.mxu1 %v1641_v25 }
  0x93   : > { %532 = vmatmul.mubr.bf16.gmra.mxu0 %v1659_v26 }
  0x94   : > { %801 = vmatmul.mubr.bf16.gmra.mxu1 %v1659_v26  ;;  %1030 = vmatpush2.bf16.msra.mxu0 %v1639_v27 }
  0x95   : > { %1457 = vmatpush2.bf16.msra.mxu1 %v1639_v27  ;;  %1031 = vmatprep.subr.bf16.mxu0 %v1644_v28 }
  0x96   : > { %1442 = vmatprep.subr.bf16.mxu1 %v1644_v28  ;;  %1045 = vmatprep.mubr.bf16.mxu0 %v1900_v48 }
  0x97   : > { %1071 = vmatprep.mubr.bf16.mxu1 %v1645_v17 }
  0x98   : > { %1032 = vmatpush2.bf16.msra.mxu0 %v1642_v29 }
  0x99   : > { %1458 = vmatpush2.bf16.msra.mxu1 %v1642_v29  ;;  %1033 = vmatprep.subr.bf16.mxu0 %v1650_v30 }
  0x9a   : > { %1443 = vmatprep.subr.bf16.mxu1 %v1650_v30 }
  0x9c   : > { %1034 = vmatpush2.bf16.msra.mxu0 %v1648_v31 }
  0x9d   : > { %1459 = vmatpush2.bf16.msra.mxu1 %v1648_v31  ;;  %1035 = vmatprep.subr.bf16.mxu0 %v1653_v32  ;;  %v1426_v31 = vld [vmem:[%s206_s4 + $0x1] ss:$8 sm:$0x3] }
  0x9e   : > { %1444 = vmatprep.subr.bf16.mxu1 %v1653_v32 }
  0xa0   : > { %1036 = vmatpush2.bf16.msra.mxu0 %v1651_v33 }
  0xa1   : > { %1460 = vmatpush2.bf16.msra.mxu1 %v1651_v33  ;;  %1037 = vmatprep.subr.bf16.mxu0 %v1656_v34  ;;  %v1104_v33 = vld [vmem:[%s206_s4] ss:$8 sm:$0x3] }
  0xa2   : > { %1445 = vmatprep.subr.bf16.mxu1 %v1656_v34 }
  0xa4   : > { %1038 = vmatpush2.bf16.msra.mxu0 %v1654_v35 }
  0xa5   : > { %1461 = vmatpush2.bf16.msra.mxu1 %v1654_v35  ;;  %1039 = vmatprep.subr.bf16.mxu0 %v1662_v36 }
  0xa6   : > { %1446 = vmatprep.subr.bf16.mxu1 %v1662_v36 }
  0xa8   : > { %1040 = vmatpush2.bf16.msra.mxu0 %v1660_v37 }
  0xa9   : > { %1462 = vmatpush2.bf16.msra.mxu1 %v1660_v37  ;;  %1041 = vmatprep.subr.bf16.mxu0 %v1665_v38 }
  0xaa   : > { %1447 = vmatprep.subr.bf16.mxu1 %v1665_v38 }
  0xac   : > { %1042 = vmatpush2.bf16.msra.mxu0 %v1663_v39 }
  0xad   : > { %1463 = vmatpush2.bf16.msra.mxu1 %v1663_v39  ;;  %1043 = vmatprep.subr.bf16.mxu0 %v1668_v40 }
  0xae   : > { %1448 = vmatprep.subr.bf16.mxu1 %v1668_v40 }
  0xb0   : > { %1044 = vmatpush2.bf16.msra.mxu0 %v1666_v41 }
  0xb1   : > { %1464 = vmatpush2.bf16.msra.mxu1 %v1666_v41 }
  0xb3   : > { %1046 = vmatmul.mubr.bf16.vlgmr.msra.gmra.mxu0 %v1924_v2 }
  0xb4   : > { %1072 = vmatmul.mubr.bf16.vlgmr.msra.gmra.mxu1 %v1974_v20  ;;  %1051 = vmatprep.mubr.bf16.mxu0 %v1931_v5 }
  0xb5   : > { %1081 = vmatprep.mubr.bf16.mxu1 %v1981_v23 }
  0xbb   : > { %1052 = vmatmul.mubr.bf16.gmra.mxu0 %v1942_v8 }
  0xbc   : > { %1082 = vmatmul.mubr.bf16.gmra.mxu1 %v1659_v26  ;;  %1061 = vmatprep.mubr.bf16.mxu0 %v1949_v11  ;;  %v1106_v26 = vlaneseq }
  0xbe   : > { %v1107_v27 = vshrl.u32 %v1106_v26, 7 }
  0xc0   : > { %v1108_v28 = vsub.s32 0, %v1107_v27  ;;  %v1112_v34 = vsub.s32 1, %v1107_v27 }
  0xc2   : > { %v2037_v40 = vrot.slane %v1426_v31, %v1108_v28  ;;  %v2039_v41 = vrot.slane %v1104_v33, %v1108_v28 }
  0xc3   : > { %1062 = vmatmul.mubr.bf16.gmra.mxu0 %v1960_v14 }
 0x133   : > { %v495_v42 = vpop.f32.mrf.mxu0 }
 0x134   : > { %v764_v43 = vpop.f32.mrf.mxu1 }
 0x135   : > { %v497_v44 = vpop.f32.mrf.mxu0 }
 0x136   : > { %v765_v45 = vpop.f32.mrf.mxu1 }
 0x137   : > { %v499_v46 = vpop.f32.mrf.mxu0 }
 0x138   : > { %v766_v47 = vpop.f32.mrf.mxu1 }
 0x139   : > { %v2015_v48 = vadd.f32 %v766_v47, %v495_v42  ;;  %v501_v49 = vpop.f32.mrf.mxu0 }
 0x13a   : > { %v768_v50 = vpop.f32.mrf.mxu1 }
 0x13b   : > { %v2017_v51 = vadd.f32 %v768_v50, %v497_v44  ;;  %v505_v53 = vpop.f32.mrf.mxu0 }
 0x13c   : > { %v772_v52 = vpop.f32.mrf.mxu1 }
 0x13d   : > { %v2019_v54 = vadd.f32 %v772_v52, %v499_v46  ;;  %v507_v56 = vpop.f32.mrf.mxu0  ;;  %v2044_v46 = vrot.slane %v1426_v31, %v1112_v34 }
 0x13e   : > { %v774_v55 = vpop.f32.mrf.mxu1 }
 0x13f   : > { %v2021_v57 = vadd.f32 %v774_v55, %v501_v49  ;;  %v509_v59 = vpop.f32.mrf.mxu0 }
 0x140   : > { %v776_v58 = vpop.f32.mrf.mxu1 }
 0x141   : > { %v2023_v60 = vadd.f32 %v776_v58, %v505_v53  ;;  %v511_v62 = vpop.f32.mrf.mxu0  ;;  %v2048_v53 = vrot.slane %v1104_v33, %v1112_v34 }
 0x142   : > { %v778_v61 = vpop.f32.mrf.mxu1 }
 0x143   : > { %v2025_v63 = vadd.f32 %v778_v61, %v507_v56  ;;  %v515_v1 = vpop.f32.mrf.mxu0 }
 0x144   : > { %v782_v0 = vpop.f32.mrf.mxu1 }
 0x145   : > { %v2027_v2 = vadd.f32 %v782_v0, %v509_v59  ;;  %v517_v4 = vpop.f32.mrf.mxu0 }
 0x146   : > { %v784_v3 = vpop.f32.mrf.mxu1 }
 0x147   : > { %v2029_v5 = vadd.f32 %v784_v3, %v511_v62  ;;  %v519_v7 = vpop.f32.mrf.mxu0 }
 0x148   : > { %v786_v6 = vpop.f32.mrf.mxu1 }
 0x149   : > { %v521_v9 = vpop.f32.mrf.mxu0  ;;  %v815_v32 = vadd.f32 %v786_v6, %v515_v1 }
 0x14a   : > { %v788_v8 = vpop.f32.mrf.mxu1 }
 0x14b   : > { %v525_v11 = vpop.f32.mrf.mxu0  ;;  %v816_v37 = vadd.f32 %v788_v8, %v517_v4 }
 0x14c   : > { %v792_v10 = vpop.f32.mrf.mxu1 }
 0x14d   : > { %v527_v13 = vpop.f32.mrf.mxu0  ;;  %v817_v38 = vadd.f32 %v792_v10, %v519_v7 }
 0x14e   : > { %v794_v12 = vpop.f32.mrf.mxu1 }
 0x14f   : > { %v529_v14 = vpop.f32.mrf.mxu0  ;;  %v818_v44 = vadd.f32 %v794_v12, %v521_v9 }
 0x150   : > { %v796_v15 = vpop.f32.mrf.mxu1 }
 0x151   : > { %v530_v16 = vpop.f32.mrf.mxu0  ;;  %v819_v58 = vadd.f32 %v796_v15, %v525_v11 }
 0x152   : > { %v798_v17 = vpop.f32.mrf.mxu1 }
 0x153   : > { %v533_v18 = vpop.f32.mrf.mxu0  ;;  %v820_v4 = vadd.f32 %v798_v17, %v527_v13 }
 0x154   : > { %v802_v19 = vpop.f32.mrf.mxu1 }
 0x155   : > { %v534_v20 = vpop.f32.mrf.mxu0 }
 0x156   : > { %v803_v21 = vpop.f32.mrf.mxu1 }
 0x157   : > { %v535_v22 = vpop.f32.mrf.mxu0 }
 0x158   : > { %v804_v23 = vpop.f32.mrf.mxu1 }
 0x159   : > { %v536_v24 = vpop.f32.mrf.mxu0 }
 0x15a   : > { %v805_v25 = vpop.f32.mrf.mxu1 }
 0x173   : > { %v1047_v29 = vpop.f32.mrf.mxu0 }
 0x174   : > { %v1073_v30 = vpop.f32.mrf.mxu1 }
 0x175   : > { %v1048_v35 = vpop.f32.mrf.mxu0  ;;  %v2035_v39 = vadd.f32 %v1073_v30, %v815_v32 }
 0x176   : > { %v1075_v36 = vpop.f32.mrf.mxu1 }
 0x177   : > { %v1049_v42 = vpop.f32.mrf.mxu0  ;;  %v2042_v45 = vadd.f32 %v1075_v36, %v816_v37  ;;  %v1153_v52 = vmul.f32 %v2037_v40, %v2035_v39 }
 0x178   : > { %v1077_v43 = vpop.f32.mrf.mxu1 }
 0x179   : > { %v1100_v47 = vadd.f32 %v1077_v43, %v817_v38  ;;  %v1050_v49 = vpop.f32.mrf.mxu0  ;;  %v1154_v62 = vmul.f32 %v2044_v46, %v2042_v45 }
 0x17a   : > { %v1079_v50 = vpop.f32.mrf.mxu1 }
 0x17b   : > { %v1126_v55 = vmul.f32 %v2039_v41, %v1100_v47  ;;  %v1101_v56 = vadd.f32 %v1079_v50, %v818_v44  ;;  %v1053_v59 = vpop.f32.mrf.mxu0  ;;  %v1155_v12 = vmul.f32 %v2037_v40, %v1100_v47  ;;  %v1124_v47 = vmul.f32 %v2039_v41, %v2035_v39 }
 0x17c   : > { %v1083_v61 = vpop.f32.mrf.mxu1  ;;  %v1090_v3 = vadd.f32 %v1053_v59, %v2015_v48 }
 0x17d   : > { %v1167_v0 = vadd.f32 %v1153_v52, %v1126_v55  ;;  %v1127_v1 = vmul.f32 %v2048_v53, %v1101_v56  ;;  %v1102_v6 = vadd.f32 %v1083_v61, %v819_v58  ;;  %v1055_v7 = vpop.f32.mrf.mxu0  ;;  %v1156_v17 = vmul.f32 %v2044_v46, %v1101_v56 }
 0x17e   : > { %v1085_v8 = vpop.f32.mrf.mxu1  ;;  %v1116_v10 = vmul.f32 %v2039_v41, %v1090_v3  ;;  %v1091_v11 = vadd.f32 %v1055_v7, %v2017_v51  ;;  %v1145_v25 = vmul.f32 %v2037_v40, %v1090_v3 }
 0x17f   : > { %1181 = vst [vmem:[%s2055_s28 + $0x50] sm:$0xff] %v1167_v0  ;;  %v1168_v9 = vadd.f32 %v1154_v62, %v1127_v1  ;;  %v1128_v14 = vmul.f32 %v2039_v41, %v1102_v6  ;;  %v1143_v48 = vmul.f32 %v2037_v40, %v1102_v6  ;;  %v1103_v13 = vadd.f32 %v1085_v8, %v820_v4  ;;  %v1057_v15 = vpop.f32.mrf.mxu0 }
 0x180   : > { %v1087_v16 = vpop.f32.mrf.mxu1  ;;  %v1117_v18 = vmul.f32 %v2048_v53, %v1091_v11  ;;  %v1092_v19 = vadd.f32 %v1057_v15, %v2019_v54  ;;  %v1146_v30 = vmul.f32 %v2044_v46, %v1091_v11 }
 0x181   : > { %1182 = vst [vmem:[%s2055_s28 + $0x58] sm:$0xff] %v1168_v9  ;;  %v1157_v20 = vadd.f32 %v1143_v48, %v1116_v10  ;;  %v1169_v51 = vadd.f32 %v1155_v12, %v1128_v14  ;;  %v1129_v21 = vmul.f32 %v2048_v53, %v1103_v13  ;;  %v1144_v22 = vmul.f32 %v2044_v46, %v1103_v13  ;;  %v1059_v23 = vpop.f32.mrf.mxu0 }
 0x182   : > { %v1088_v24 = vpop.f32.mrf.mxu1  ;;  %v1118_v26 = vmul.f32 %v2039_v41, %v1092_v19  ;;  %v1093_v27 = vadd.f32 %v1059_v23, %v2021_v57  ;;  %v1147_v35 = vmul.f32 %v2037_v40, %v1092_v19 }
 0x183   : > { %1171 = vst [vmem:[%s2055_s28] sm:$0xff] %v1157_v20  ;;  %1183 = vst [vmem:[%s2055_s28 + $0x60] sm:$0xff] %v1169_v51  ;;  %v1158_v54 = vadd.f32 %v1144_v22, %v1117_v18  ;;  %v1170_v28 = vadd.f32 %v1156_v17, %v1129_v21  ;;  %v1063_v29 = vpop.f32.mrf.mxu0 }
 0x184   : > { %v1159_v31 = vadd.f32 %v1145_v25, %v1118_v26  ;;  %v1119_v32 = vmul.f32 %v2048_v53, %v1093_v27  ;;  %v1094_v33 = vadd.f32 %v1063_v29, %v2023_v60  ;;  %v1148_v42 = vmul.f32 %v2044_v46, %v1093_v27 }
 0x185   : > { %1172 = vst [vmem:[%s2055_s28 + $0x8] sm:$0xff] %v1158_v54  ;;  %1184 = vst [vmem:[%s2055_s28 + $0x68] sm:$0xff] %v1170_v28  ;;  %v1065_v34 = vpop.f32.mrf.mxu0 }
 0x186   : > { %1173 = vst [vmem:[%s2055_s28 + $0x10] sm:$0xff] %v1159_v31  ;;  %v1160_v57 = vadd.f32 %v1146_v30, %v1119_v32  ;;  %v1120_v36 = vmul.f32 %v2039_v41, %v1094_v33  ;;  %v1095_v37 = vadd.f32 %v1065_v34, %v2025_v63  ;;  %v1149_v49 = vmul.f32 %v2037_v40, %v1094_v33  ;;  %v1227_v8 = vld [vmem:[%s2055_s28 + $0x50] sm:$0xff] (%p2146_p10) }
 0x187   : > { %v1067_v38 = vpop.f32.mrf.mxu0  ;;  %1228 = vst [vmem:[%s1194_s11 + $0xa0] sm:$0xff] (%p2146_p10), %v1227_v8 }
 0x188   : > { %1174 = vst [vmem:[%s2055_s28 + $0x18] sm:$0xff] %v1160_v57  ;;  %v1161_v43 = vadd.f32 %v1147_v35, %v1120_v36  ;;  %v1121_v60 = vmul.f32 %v2048_v53, %v1095_v37  ;;  %v1096_v44 = vadd.f32 %v1067_v38, %v2027_v2  ;;  %v1125_v2 = vmul.f32 %v2048_v53, %v2042_v45  ;;  %v1229_v9 = vld [vmem:[%s2055_s28 + $0x58] sm:$0xff] (%p2146_p10) }
 0x189   : > { %v1069_v50 = vpop.f32.mrf.mxu0  ;;  %v1150_v58 = vmul.f32 %v2044_v46, %v1095_v37  ;;  %1230 = vst [vmem:[%s1194_s11 + $0xa8] sm:$0xff] (%p2146_p10), %v1229_v9 }
 0x18a   : > { %1175 = vst [vmem:[%s2055_s28 + $0x20] sm:$0xff] %v1161_v43  ;;  %v1162_v63 = vadd.f32 %v1148_v42, %v1121_v60  ;;  %v1122_v52 = vmul.f32 %v2039_v41, %v1096_v44  ;;  %v1151_v55 = vmul.f32 %v2037_v40, %v1096_v44  ;;  %v1097_v56 = vadd.f32 %v1069_v50, %v2029_v5  ;;  %v1207_v5 = vld [vmem:[%s2055_s28] sm:$0xff] (%p2146_p10) }
 0x18b   : > { %1208 = vst [vmem:[%s1194_s11] sm:$0xff] (%p2146_p10), %v1207_v5  ;;  %v1231_v10 = vld [vmem:[%s2055_s28 + $0x60] sm:$0xff] (%p2146_p10) }
 0x18c   : > { %1176 = vst [vmem:[%s2055_s28 + $0x28] sm:$0xff] %v1162_v63  ;;  %v1163_v39 = vadd.f32 %v1149_v49, %v1122_v52  ;;  %v1165_v59 = vadd.f32 %v1151_v55, %v1124_v47  ;;  %v1123_v61 = vmul.f32 %v2048_v53, %v1097_v56  ;;  %v1152_v62 = vmul.f32 %v2044_v46, %v1097_v56  ;;  %1191 = sbr.rel (!%p2146_p10) target bundleno = 409 (0x199), region = 40  ;;  %v1209_v40 = vld [vmem:[%s2055_s28 + $0x8] sm:$0xff] (%p2146_p10) }
 0x18d   : > { %v1211_v45 = vld [vmem:[%s2055_s28 + $0x10] sm:$0xff] (%p2146_p10)  ;;  %1210 = vst [vmem:[%s1194_s11 + $0x8] sm:$0xff] (%p2146_p10), %v1209_v40  ;;  %v1233_v11 = vld [vmem:[%s2055_s28 + $0x68] sm:$0xff] (%p2146_p10)  ;;  %1232 = vst [vmem:[%s1194_s11 + $0xc0] sm:$0xff] (%p2146_p10), %v1231_v10 }
 0x18e   : > { %1177 = vst [vmem:[%s2055_s28 + $0x30] sm:$0xff] %v1163_v39  ;;  %1179 = vst [vmem:[%s2055_s28 + $0x40] sm:$0xff] %v1165_v59  ;;  %v1164_v0 = vadd.f32 %v1150_v58, %v1123_v61  ;;  %v1166_v41 = vadd.f32 %v1152_v62, %v1125_v2 }
 0x18f   : > { %v1213_v46 = vld [vmem:[%s2055_s28 + $0x18] sm:$0xff] (%p2146_p10)  ;;  %1212 = vst [vmem:[%s1194_s11 + $0x20] sm:$0xff] (%p2146_p10), %v1211_v45  ;;  %1234 = vst [vmem:[%s1194_s11 + $0xc8] sm:$0xff] (%p2146_p10), %v1233_v11 }
 0x190   : > { %1178 = vst [vmem:[%s2055_s28 + $0x38] sm:$0xff] %v1164_v0  ;;  %1180 = vst [vmem:[%s2055_s28 + $0x48] sm:$0xff] %v1166_v41 }
 0x191   : > { %v1215_v53 = vld [vmem:[%s2055_s28 + $0x20] sm:$0xff]  ;;  %1214 = vst [vmem:[%s1194_s11 + $0x28] sm:$0xff] %v1213_v46 }
 0x192   : > { %1216 = vst [vmem:[%s1194_s11 + $0x40] sm:$0xff] %v1215_v53 }
 0x193   : > { %v1217_v1 = vld [vmem:[%s2055_s28 + $0x28] sm:$0xff] }
 0x194   : > { %1218 = vst [vmem:[%s1194_s11 + $0x48] sm:$0xff] %v1217_v1 }
 0x195   : > { %v1219_v3 = vld [vmem:[%s2055_s28 + $0x30] sm:$0xff]  ;;  %v1223_v6 = vld [vmem:[%s2055_s28 + $0x40] sm:$0xff] }
 0x196   : > { %1220 = vst [vmem:[%s1194_s11 + $0x60] sm:$0xff] %v1219_v3  ;;  %1224 = vst [vmem:[%s1194_s11 + $0x80] sm:$0xff] %v1223_v6 }
 0x197   : > { %v1221_v4 = vld [vmem:[%s2055_s28 + $0x38] sm:$0xff]  ;;  %v1225_v7 = vld [vmem:[%s2055_s28 + $0x48] sm:$0xff] }
 0x198   : > { %1222 = vst [vmem:[%s1194_s11 + $0x68] sm:$0xff] %v1221_v4  ;;  %1226 = vst [vmem:[%s1194_s11 + $0x88] sm:$0xff] %v1225_v7 }
 0x199 PF: > { %p13_p2 = scmp.ge.s32.totalorder %s1779_s17, 4   ;;  %s2147_s12 = smov %s1723_s13 }
 0x19a   : > { %s2148_s13 = smov %s1727_s14  ;;  %s2149_s14 = smov %s1789_s20 }
 0x19b   : > { %s2150_s15 = smov %s1779_s17  ;;  %15 = sbr.rel (!%p13_p2) target bundleno = 3 (0x3), region = 99 }
 0x1a0   :  { %1250 = vsyncpa [#allocation3], 1 }
 0x1a1   :  { %1252 = vsyncpa [#allocation3 + $0x1], 1 }

</bundles_post_ra>
